<compile_context>
chip_gen: v6e
topology: v6e:2x2x1
jax: 0.10.0
libtpu: 0.0.40
codegen_flags: <defaults>
</compile_context>

<pallas_src>
import functools

import jax
import jax.numpy as jnp
from jax.experimental import pallas as pl
from jax.experimental.pallas import tpu as pltpu

_LANES = 1024      # lane-dense last dim (multiple of 128)
_SUBLANES = 8      # sublane alignment for f32


def _round_up(x, m):
    return ((x + m - 1) // m) * m


# ----------------------------- fire() kernel ------------------------------ #
def _fire_kernel(mem_ref, spk_ref, *, threshold):
    # Heaviside (spec: 1.0 where mem - threshold >= 0) — single VPU compare+cast.
    spk_ref[...] = (mem_ref[...] >= threshold).astype(spk_ref.dtype)


def lif_fire(mem, threshold=1.0, block_rows=512):
    """mem: any-shape float array (e.g. NCHW) -> (spk, reset), same shape/dtype."""
    orig_shape = mem.shape
    dtype = mem.dtype
    total = mem.size

    # Flatten to a lane+sublane-dense 2D slab: (rows, 1024), rows % 8 == 0.
    rows = pl.cdiv(total, _LANES)
    rows = _round_up(rows, _SUBLANES)
    tm = min(block_rows, rows)
    tm = _round_up(tm, _SUBLANES)
    rows = _round_up(rows, tm)           # pad rows so the grid divides evenly
    padded_total = rows * _LANES

    flat = mem.reshape(-1)
    if padded_total != total:
        flat = jnp.pad(flat, (0, padded_total - total))
    slab = flat.reshape(rows, _LANES)

    kernel = functools.partial(_fire_kernel, threshold=float(threshold))
    spk_slab = pl.pallas_call(
        kernel,
        grid=(rows // tm,),
        out_shape=jax.ShapeDtypeStruct((rows, _LANES), dtype),
        in_specs=[pl.BlockSpec((tm, _LANES), lambda i: (i, 0))],
        out_specs=pl.BlockSpec((tm, _LANES), lambda i: (i, 0)),
        compiler_params=pltpu.CompilerParams(
            dimension_semantics=("parallel",)),
    )(slab)

    spk = spk_slab.reshape(-1)[:total].reshape(orig_shape)
    reset = jax.lax.stop_gradient(spk)   # reset = spk.clone().detach()
    return spk, reset


# ------------------------ fire_inhibition() kernel ------------------------ #
def _fire_inhibition_kernel(mem_ref, spk_ref, *, threshold):
    mem_shift = mem_ref[...] - threshold
    tb, n = mem_shift.shape

    # First-occurrence argmax over axis 1 (matches torch.argmax tie-break).
    # Exact-equality against the row max is safe: both computed at f32.
    row_max = jnp.max(mem_shift, axis=1, keepdims=True)
    col = jax.lax.broadcasted_iota(jnp.int32, (tb, n), 1)
    idx_cand = jnp.where(mem_shift == row_max, col, n)
    argmax = jnp.min(idx_cand, axis=1, keepdims=True)

    # Winner-only Heaviside in a single select.
    spk = jnp.where((col == argmax) & (mem_shift >= 0.0), 1.0, 0.0)
    spk_ref[...] = spk.astype(spk_ref.dtype)


def lif_fire_inhibition(mem, threshold=1.0, block_batch=256):
    """mem: (B, N) float -> (spk, reset); only the argmax neuron per row may spike."""
    B, N = mem.shape
    dtype = mem.dtype

    pb = _round_up(B, _SUBLANES)
    tb = min(block_batch, pb)
    tb = _round_up(tb, _SUBLANES)
    pb = _round_up(pb, tb)
    mem_p = jnp.pad(mem, ((0, pb - B), (0, 0))) if pb != B else mem

    kernel = functools.partial(_fire_inhibition_kernel, threshold=float(threshold))
    spk_p = pl.pallas_call(
        kernel,
        grid=(pb // tb,),
        out_shape=jax.ShapeDtypeStruct((pb, N), dtype),
        in_specs=[pl.BlockSpec((tb, N), lambda i: (i, 0))],   # full rows per block
        out_specs=pl.BlockSpec((tb, N), lambda i: (i, 0)),
        compiler_params=pltpu.CompilerParams(
            dimension_semantics=("parallel",)),
    )(mem_p)

    spk = spk_p[:B]
    reset = jax.lax.stop_gradient(spk)
    return spk, reset


# ----------------------------- init helpers ------------------------------- #
def init_stein(batch_size, *args, dtype=jnp.float32):
    syn = jnp.zeros((batch_size, *args), dtype=dtype)
    mem = jnp.zeros((batch_size, *args), dtype=dtype)
    spk = jnp.zeros((batch_size, *args), dtype=dtype)
    return spk, syn, mem


def init_srm0(batch_size, *args, dtype=jnp.float32):
    syn_pre = jnp.zeros((batch_size, *args), dtype=dtype)
    syn_post = jnp.zeros((batch_size, *args), dtype=dtype)
    mem = jnp.zeros((batch_size, *args), dtype=dtype)
    spk = jnp.zeros((batch_size, *args), dtype=dtype)
    return spk, syn_pre, syn_post, mem

# TODO(synk): Heaviside.backward (surrogate gradient) is a training-time autograd
# rule, not a forward op — not implemented here.


if __name__ == "__main__":
    key = jax.random.PRNGKey(0)
    k1, k2, k3, k4 = jax.random.split(key, 4)
    threshold = 1.0

    # ---- fire(): NCHW membrane potential, (B=2, C=4, H=16, W=16) ----
    mem_nchw = jax.random.normal(k1, (2, 4, 16, 16), dtype=jnp.float32) * 2.0
    spk, reset = lif_fire(mem_nchw, threshold=threshold)
    spk, reset = jax.block_until_ready((spk, reset))

    ref_spk = jnp.where(mem_nchw - threshold >= 0.0, 1.0, 0.0)
    assert spk.shape == mem_nchw.shape and spk.dtype == mem_nchw.dtype
    assert jnp.array_equal(spk, ref_spk)
    assert jnp.array_equal(reset, ref_spk)

    # ---- fire() on a larger tensor, forcing a multi-step grid (grid > 1) ----
    mem_big = jax.random.normal(k3, (8, 16, 32, 32), dtype=jnp.float32) * 2.0
    spk_b, reset_b = lif_fire(mem_big, threshold=threshold, block_rows=64)
    spk_b = jax.block_until_ready(spk_b)
    ref_b = jnp.where(mem_big - threshold >= 0.0, 1.0, 0.0)
    assert jnp.array_equal(spk_b, ref_b)
    assert jnp.array_equal(reset_b, ref_b)

    # ---- fire_inhibition(): (B=2, N=128) membrane potential ----
    mem_flat = jax.random.normal(k2, (2, 128), dtype=jnp.float32) * 2.0
    spk_i, reset_i = lif_fire_inhibition(mem_flat, threshold=threshold)
    spk_i, reset_i = jax.block_until_ready((spk_i, reset_i))

    shift = mem_flat - threshold
    idx = jnp.argmax(shift, axis=1)
    onehot = jax.nn.one_hot(idx, mem_flat.shape[1], dtype=mem_flat.dtype)
    ref_spk_i = jnp.where(shift >= 0.0, 1.0, 0.0) * onehot
    assert jnp.array_equal(spk_i, ref_spk_i)
    assert jnp.array_equal(reset_i, ref_spk_i)

    # ---- fire_inhibition() with batch tiling over multiple grid steps ----
    mem_flat2 = jax.random.normal(k4, (24, 256), dtype=jnp.float32) * 2.0
    spk_i2, _ = lif_fire_inhibition(mem_flat2, threshold=threshold, block_batch=8)
    spk_i2 = jax.block_until_ready(spk_i2)
    shift2 = mem_flat2 - threshold
    idx2 = jnp.argmax(shift2, axis=1)
    onehot2 = jax.nn.one_hot(idx2, mem_flat2.shape[1], dtype=mem_flat2.dtype)
    ref_spk_i2 = jnp.where(shift2 >= 0.0, 1.0, 0.0) * onehot2
    assert jnp.array_equal(spk_i2, ref_spk_i2)

    # ---- state init helper sanity ----
    spk0, syn0, mem0 = init_stein(2, 4, 16, 16)
    assert spk0.shape == (2, 4, 16, 16) and float(jnp.sum(mem0)) == 0.0
    srm = init_srm0(2, 4, 16, 16)
    assert len(srm) == 4 and srm[0].shape == (2, 4, 16, 16)

    print("KERNEL_OK")
</pallas_src>

<mosaic_0001>
module attributes {stable_mosaic.version = 11 : i64} {
  func.func @_fire_kernel(%arg0: i32, %arg1: memref<8x1024xf32, #tpu.memory_space<vmem>>, %arg2: memref<8x1024xf32, #tpu.memory_space<vmem>>) attributes {dimension_semantics = [#tpu.dimension_semantics<parallel>], iteration_bounds = array<i64: 1>, scalar_prefetch = 0 : i64, scratch_operands = 0 : i64, tpu.core_type = #tpu.core_type<tc>, window_params = [{transform_indices = @transform_0, window_bounds = array<i64: 8, 1024>}, {transform_indices = @transform_1, window_bounds = array<i64: 8, 1024>}]} {
    %c0 = arith.constant 0 : index
    %c0_0 = arith.constant 0 : index
    %0 = vector.load %arg1[%c0, %c0_0] : memref<8x1024xf32, #tpu.memory_space<vmem>>, vector<8x1024xf32>
    %cst = arith.constant 1.000000e+00 : f32
    %1 = vector.broadcast %cst : f32 to vector<8x1024xf32>
    %2 = arith.cmpf oge, %0, %1 : vector<8x1024xf32>
    %3 = arith.extui %2 : vector<8x1024xi1> to vector<8x1024xi32>
    %4 = arith.sitofp %3 : vector<8x1024xi32> to vector<8x1024xf32>
    %c0_1 = arith.constant 0 : index
    %c0_2 = arith.constant 0 : index
    %5 = vector.load %arg2[%c0_1, %c0_2] : memref<8x1024xf32, #tpu.memory_space<vmem>>, vector<8x1024xf32>
    tpu.vector_store %arg2[%c0_1, %c0_2], %4 {strides = array<i32>} : memref<8x1024xf32, #tpu.memory_space<vmem>>, vector<8x1024xf32>,
    return
  }
  func.func @transform_0(%arg0: i32) -> (i32, i32) {
    %c0_i32 = arith.constant 0 : i32
    %c0_i32_0 = arith.constant 0 : i32
    return %arg0, %c0_i32 : i32, i32
  }
  func.func @transform_1(%arg0: i32) -> (i32, i32) {
    %c0_i32 = arith.constant 0 : i32
    %c0_i32_0 = arith.constant 0 : i32
    return %arg0, %c0_i32 : i32, i32
  }
}

</mosaic_0001>

<bundles_post_ra>
// kernel: tpu_custom_call.1
= control target key start
LH: loop header
LB: loop body
LE: loop exit
PB: predicated region body
PF: predicated region fallthrough
CT: control target
= control target key end

     0   :  { %6 = vsyncpa [#allocation3], 0  ;;  %s150_s0 = inlined_call_operand.hbm [shape: f32[8,1024], index: 0, kind: input, shape index: {}]   ;;  %s151_s1 = inlined_call_operand.hbm [shape: f32[8,1024], index: 1, kind: output, shape index: {}]  }
   0x1   :  { %7 = vsyncpa [#allocation4], 0  ;;  %s131_s6 = smov [#allocation2]  }
   0x2   :  { %s14_s7 = sshll.u32 %s131_s6, 4  ;;  %s15_s7 = int_to_ptr.vmem [resolvable:$true] %s14_s7 }
   0x3   :  { %s95_s8 = scalar_lea.vmem %s15_s7, 1024  ;;  %p100_p1 = scmp.lt.s32.totalorder %s15_s7, %s15_s7 }
   0x4   :  { %p96_p0 = scmp.ne.s32.totalorder %s15_s7, %s95_s8  ;;  %p101_p2 = scmp.lt.s32.totalorder %s95_s8, %s95_s8 }
   0x6   :  { %p102_p3 = por %p101_p2, %p100_p1 }
   0x8   :  { %p103_p4 = pnand %p102_p3, %p96_p0 }
   0xa   :  { %106 = shalt.err (!%p103_p4)
}
   0xb   :  { %17 = dma.hbm_to_vmem [thread:$0]  %s150_s0, 1024, %s15_s7, [#allocation3]  }
   0xc   :  { %127 = dma.done.wait [#allocation3], 1024  }
   0xd   :  { %128 = vsyncadd [#allocation3], 4294966272  ;;  %v21_v0 = vld [vmem:[#allocation2] sm:$0xff]  ;;  %v22_v1 = vld [vmem:[#allocation2 + $0x8] sm:$0xff]  ;;  %s132_s11 = smov [#allocation5]   ;;  %v133_v6 = vmov 0.0  }
   0xe   :  { %v23_v2 = vld [vmem:[#allocation2 + $0x10] sm:$0xff]  ;;  %s67_s12 = sshll.u32 %s132_s11, 4  ;;  %vm29_vm0 = vcmp.ge.f32.partialorder %v21_v0, 1.0  ;;  %vm30_vm1 = vcmp.ge.f32.partialorder %v22_v1, 1.0  ;;  %v24_v3 = vld [vmem:[#allocation2 + $0x18] sm:$0xff]  ;;  %v25_v4 = vld [vmem:[#allocation2 + $0x20] sm:$0xff]  ;;  %s68_s12 = int_to_ptr.vmem [resolvable:$true] %s67_s12 }
   0xf   :  { %vm31_vm2 = vcmp.ge.f32.partialorder %v23_v2, 1.0  ;;  %v26_v5 = vld [vmem:[#allocation2 + $0x28] sm:$0xff]  ;;  %v76_v7 = vsel %vm29_vm0, 1.0, %v133_v6  ;;  %v77_v8 = vsel %vm30_vm1, 1.0, %v133_v6  ;;  %vm32_vm3 = vcmp.ge.f32.partialorder %v24_v3, 1.0  ;;  %v27_v10 = vld [vmem:[#allocation2 + $0x30] sm:$0xff]  ;;  %p112_p6 = scmp.lt.s32.totalorder %s68_s12, %s68_s12 }
  0x10   :  { %v78_v9 = vsel %vm31_vm2, 1.0, %v133_v6  ;;  %v28_v11 = vld [vmem:[#allocation2 + $0x38] sm:$0xff]  ;;  %53 = vst [vmem:[#allocation5] sm:$0xff] %v76_v7  ;;  %54 = vst [vmem:[#allocation5 + $0x8] sm:$0xff] %v77_v8  ;;  %v79_v12 = vsel %vm32_vm3, 1.0, %v133_v6  ;;  %vm33_vm4 = vcmp.ge.f32.partialorder %v25_v4, 1.0 }
  0x11   :  { %55 = vst [vmem:[#allocation5 + $0x10] sm:$0xff] %v78_v9  ;;  %vm34_vm5 = vcmp.ge.f32.partialorder %v26_v5, 1.0  ;;  %vm35_vm6 = vcmp.ge.f32.partialorder %v27_v10, 1.0  ;;  %56 = vst [vmem:[#allocation5 + $0x18] sm:$0xff] %v79_v12  ;;  %v80_v13 = vsel %vm33_vm4, 1.0, %v133_v6  ;;  %vm36_vm7 = vcmp.ge.f32.partialorder %v28_v11, 1.0 }
  0x12   :  { %v81_v14 = vsel %vm34_vm5, 1.0, %v133_v6  ;;  %v82_v15 = vsel %vm35_vm6, 1.0, %v133_v6  ;;  %57 = vst [vmem:[#allocation5 + $0x20] sm:$0xff] %v80_v13  ;;  %v83_v16 = vsel %vm36_vm7, 1.0, %v133_v6  ;;  %s107_s0 = scalar_lea.vmem %s68_s12, 1024 }
  0x13   :  { %58 = vst [vmem:[#allocation5 + $0x28] sm:$0xff] %v81_v14  ;;  %59 = vst [vmem:[#allocation5 + $0x30] sm:$0xff] %v82_v15  ;;  %p108_p5 = scmp.ne.s32.totalorder %s68_s12, %s107_s0  ;;  %p113_p7 = scmp.lt.s32.totalorder %s107_s0, %s107_s0 }
  0x14   :  { %60 = vst [vmem:[#allocation5 + $0x38] sm:$0xff] %v83_v16 }
  0x15   :  { %p114_p8 = por %p113_p7, %p112_p6 }
  0x17   :  { %p115_p9 = pnand %p114_p8, %p108_p5 }
  0x19   :  { %118 = shalt.err (!%p115_p9)
}
  0x1a   :  { %70 = dma.vmem_to_hbm [thread:$0]  %s68_s12, 1024, %s151_s1, [#allocation4]  }
  0x1b   :  { %129 = dma.done.wait [#allocation4], 1024  }
  0x1c   :  { %130 = vsyncadd [#allocation4], 4294966272 }
  0x1d   :  { %74 = vsyncpa [#allocation3], 1 }
  0x1e   :  { %75 = vsyncpa [#allocation4], 1 }

</bundles_post_ra>
